<compile_context>
chip_gen: v7x
topology: tpu7x:2x2x1
jax: 0.10.0
libtpu: 0.0.40
codegen_flags: <defaults>
</compile_context>

<pallas_src>
import jax
import jax.numpy as jnp
from jax.experimental import pallas as pl
from jax.experimental.pallas import tpu as pltpu

P = 3.0  # module default; finite & nonzero -> generalized-mean branch

_MIN_GRID_STEPS = 8  # keep >= this many grid steps (v7x 2-core sharding + pipelining)


# --------------------------------------------------------------------------
# Kernels
# --------------------------------------------------------------------------
def gem_pool_kernel(x_ref, o_ref):
    """Full-S-resident path: x_ref (TB, S, TD) in wire dtype, o_ref (TB, TD)."""
    xw = x_ref[...]                                     # wire dtype (bf16 stays bf16)
    s = xw.shape[1]

    # min over the fully-resident step axis, in the native dtype (min is exact)
    mins = jnp.min(xw, axis=1, keepdims=True)           # (TB, 1, TD)

    # upcast fused into the shift; only one block-sized f32 temp stays live
    x_off = xw.astype(jnp.float32) - mins.astype(jnp.float32) + 1.0   # (TB, S, TD)

    # p=3: cube via two VPU multiplies (no EUP exp/log in the hot loop)
    cube = x_off * x_off * x_off
    mean_p = jnp.sum(cube, axis=1) * (1.0 / s)           # (TB, TD) sublane reduce

    # cheap epilogue on the small (TB, TD) tile -- EUP pow, hidden under DMA
    gmean = mean_p ** (1.0 / P)
    o_ref[...] = (gmean + mins[:, 0, :].astype(jnp.float32) - 1.0).astype(o_ref.dtype)


def _min_kernel(x_ref, m_ref):
    """Sweep 1 of the two-sweep fallback: running min over S chunks."""
    @pl.when(pl.program_id(2) == 0)
    def _():
        m_ref[...] = jnp.full(m_ref.shape, jnp.inf, dtype=m_ref.dtype)

    m_ref[...] = jnp.minimum(m_ref[...], jnp.min(x_ref[...], axis=1))


def _make_gem_sum_kernel(s_total):
    """Sweep 2 of the two-sweep fallback: cube-sum over S chunks, given mins."""
    inv_s = 1.0 / float(s_total)

    def kernel(x_ref, m_ref, o_ref, acc_ref):
        k = pl.program_id(2)

        @pl.when(k == 0)
        def _():
            acc_ref[...] = jnp.zeros(acc_ref.shape, acc_ref.dtype)

        minsf = m_ref[...].astype(jnp.float32)[:, None, :]            # (TB, 1, TD)
        x_off = x_ref[...].astype(jnp.float32) - minsf + 1.0          # (TB, TS, TD)
        acc_ref[...] += jnp.sum(x_off * x_off * x_off, axis=1)

        @pl.when(k == pl.num_programs(2) - 1)
        def _():
            mean_p = acc_ref[...] * inv_s
            gmean = mean_p ** (1.0 / P)
            o_ref[...] = (gmean + m_ref[...].astype(jnp.float32) - 1.0
                          ).astype(o_ref.dtype)

    return kernel


# --------------------------------------------------------------------------
# Tiling / VMEM accounting
# --------------------------------------------------------------------------
def _vmem_capacity_bytes():
    """Generation-aware VMEM capacity (128 MiB v5e/v6e, 64 MiB per-TC v7x)."""
    try:
        return int(pltpu.get_tpu_info().vmem_capacity_bytes)
    except Exception:
        return 64 * 1024 * 1024   # conservative default (safe on all generations)


def _block_bytes(TB, S, TD, itemsize):
    """Real footprint of one full-S block: double-buffered wire input +
    in-kernel f32 working set (x_off / cube) + double-buffered output."""
    wire = 2 * TB * S * TD * itemsize
    f32 = 2 * TB * S * TD * 4
    out = 2 * TB * TD * itemsize
    return wire + f32 + out


def _chunk_bytes(TB, TS, TD, itemsize):
    """Footprint of one S-chunk block in the two-sweep fallback."""
    wire = 2 * TB * TS * TD * itemsize
    f32 = 2 * TB * TS * TD * 4
    side = 4 * TB * TD * itemsize + TB * TD * 4   # mins + out blocks + f32 acc
    return wire + f32 + side


def _td_candidates(D):
    """Prefer full lane extent (contiguous HBM); only then 128-multiples."""
    cands = [D]
    if D % 128 == 0:
        for c in (2048, 1024, 512, 256, 128):
            if c < D and D % c == 0:
                cands.append(c)
    return cands


def _choose_tiles(B, S, D, itemsize, budget):
    tb_min = 8 if B % 8 == 0 else B
    cands = _td_candidates(D)
    TD = cands[-1]
    fits = False
    for c in cands:                       # largest TD (full D first) that fits
        if _block_bytes(tb_min, S, c, itemsize) <= budget:
            TD = c
            fits = True
            break
    TB = tb_min
    if fits and B % 8 == 0:
        # Grow TB while it fits AND the grid keeps enough steps for both v7x
        # cores and for DMA/compute overlap.
        while (B % (TB * 2) == 0
               and _block_bytes(TB * 2, S, TD, itemsize) <= budget
               and (B // (TB * 2)) * (D // TD) >= _MIN_GRID_STEPS):
            TB *= 2
    return TB, TD, fits


# --------------------------------------------------------------------------
# Wrappers
# --------------------------------------------------------------------------
def _gem_pool_two_sweep(x, budget, cap):
    """Two-sweep S-reduction path for sequences that can't stay fully resident."""
    B, S, D = x.shape
    itemsize = jnp.dtype(x.dtype).itemsize
    TB = 8 if B % 8 == 0 else B

    cands = _td_candidates(D)
    TD = cands[-1]
    for c in cands:
        if _chunk_bytes(TB, 8, c, itemsize) <= budget:
            TD = c
            break

    TS = 8
    for c in (2048, 1024, 512, 256, 128, 64, 32, 16, 8):
        if c <= S and S % c == 0 and _chunk_bytes(TB, c, TD, itemsize) <= budget:
            TS = c
            break

    grid = (B // TB, D // TD, S // TS)
    limit = min((cap * 7) // 8,
                max(32 << 20, _chunk_bytes(TB, TS, TD, itemsize) + (8 << 20)))
    cp = pltpu.CompilerParams(
        dimension_semantics=("parallel", "parallel", "arbitrary"),
        vmem_limit_bytes=limit,
    )
    x_spec = pl.BlockSpec((TB, TS, TD), lambda b, d, s: (b, s, d))
    bd_spec = pl.BlockSpec((TB, TD), lambda b, d, s: (b, d))

    mins = pl.pallas_call(
        _min_kernel,
        out_shape=jax.ShapeDtypeStruct((B, D), x.dtype),
        grid=grid,
        in_specs=[x_spec],
        out_specs=bd_spec,
        compiler_params=cp,
    )(x)

    return pl.pallas_call(
        _make_gem_sum_kernel(S),
        out_shape=jax.ShapeDtypeStruct((B, D), x.dtype),
        grid=grid,
        in_specs=[x_spec, bd_spec],
        out_specs=bd_spec,
        scratch_shapes=[pltpu.VMEM((TB, TD), jnp.float32)],
        compiler_params=cp,
    )(x, mins)


def generalized_mean_pooling_1d(x, *, tb=None, td=None, vmem_budget_bytes=None):
    B, S, D = x.shape
    itemsize = jnp.dtype(x.dtype).itemsize
    cap = _vmem_capacity_bytes()
    if vmem_budget_bytes is None:
        vmem_budget_bytes = (cap * 3) // 8    # ~48 MiB on v5e/v6e, ~24 MiB on v7x

    TB, TD, fits = _choose_tiles(B, S, D, itemsize, vmem_budget_bytes)
    if tb is not None:
        assert B % tb == 0, f"tb={tb} must divide B={B}"
        TB = tb
    if td is not None:
        assert D % td == 0, f"td={td} must divide D={D}"
        TD = td

    # Long-S fallback: chunk the step axis instead of capping TB / OOM-ing.
    if tb is None and td is None and not fits and S % 8 == 0:
        return _gem_pool_two_sweep(x, vmem_budget_bytes, cap)
    # TODO(synk): if S % 8 != 0 and the full-S block still exceeds the budget,
    # we fall through with a generous vmem limit; a masked-tail S reduction is
    # not implemented.

    block_bytes = _block_bytes(TB, S, TD, itemsize)
    limit = min((cap * 7) // 8, max(32 << 20, block_bytes + (8 << 20)))
    grid = (B // TB, D // TD)

    return pl.pallas_call(
        gem_pool_kernel,
        out_shape=jax.ShapeDtypeStruct((B, D), x.dtype),
        grid=grid,
        in_specs=[pl.BlockSpec((TB, S, TD), lambda b, d: (b, 0, d))],
        out_specs=pl.BlockSpec((TB, TD), lambda b, d: (b, d)),
        compiler_params=pltpu.CompilerParams(
            dimension_semantics=("parallel", "parallel"),
            vmem_limit_bytes=limit,
        ),
    )(x)


def reference(x, p=P):
    # pure-JAX reference mirroring the PyTorch forward (default p branch)
    x = x.astype(jnp.float32)
    mins = jnp.min(x, axis=1, keepdims=True)
    x_off = x - mins + 1.0
    x_off = jnp.mean(x_off ** p, axis=1, keepdims=True) ** (1.0 / p)
    out = x_off + mins - 1.0
    return jnp.squeeze(out, axis=1)


if __name__ == "__main__":
    # --- 1) small single-block shape (full-extent tiles) ---
    B, S, D = 2, 8, 32
    x = jax.random.normal(jax.random.PRNGKey(0), (B, S, D), dtype=jnp.float32)
    out = jax.block_until_ready(generalized_mean_pooling_1d(x))
    ref = reference(x)
    assert out.shape == (B, D), out.shape
    assert jnp.allclose(out, ref.astype(out.dtype), atol=1e-5, rtol=1e-5), \
        "mismatch vs reference (small)"

    # --- 2) multi-block (B, D) grid with lane-dense tiles (manual override) ---
    B2, S2, D2 = 16, 16, 256
    x2 = jax.random.normal(jax.random.PRNGKey(1), (B2, S2, D2), dtype=jnp.float32)
    out2 = jax.block_until_ready(
        generalized_mean_pooling_1d(x2, tb=8, td=128))   # grid = (2, 2)
    ref2 = reference(x2)
    assert out2.shape == (B2, D2), out2.shape
    assert jnp.allclose(out2, ref2.astype(out2.dtype), atol=1e-5, rtol=1e-5), \
        "mismatch vs reference (tiled)"

    # --- 3) two-sweep S-reduction fallback (forced via a tiny VMEM budget) ---
    B3, S3, D3 = 8, 32, 256
    x3 = jax.random.normal(jax.random.PRNGKey(2), (B3, S3, D3), dtype=jnp.float32)
    out3 = jax.block_until_ready(
        generalized_mean_pooling_1d(x3, vmem_budget_bytes=192 * 1024))
    ref3 = reference(x3)
    assert out3.shape == (B3, D3), out3.shape
    assert jnp.allclose(out3, ref3.astype(out3.dtype), atol=1e-4, rtol=1e-4), \
        "mismatch vs reference (two-sweep)"

    print("KERNEL_OK")
</pallas_src>

<mosaic_0001>
module attributes {stable_mosaic.version = 11 : i64} {
  func.func @gem_pool_kernel(%arg0: i32, %arg1: i32, %arg2: memref<2x8x32xf32, #tpu.memory_space<vmem>>, %arg3: memref<2x32xf32, #tpu.memory_space<vmem>>) attributes {dimension_semantics = [#tpu.dimension_semantics<parallel>, #tpu.dimension_semantics<parallel>], iteration_bounds = array<i64: 1, 1>, scalar_prefetch = 0 : i64, scratch_operands = 0 : i64, tpu.core_type = #tpu.core_type<tc>, window_params = [{transform_indices = @transform_0, window_bounds = array<i64: 2, 8, 32>}, {transform_indices = @transform_1, window_bounds = array<i64: 2, 32>}]} {
    %c0 = arith.constant 0 : index
    %c0_0 = arith.constant 0 : index
    %c0_1 = arith.constant 0 : index
    %0 = vector.load %arg2[%c0, %c0_0, %c0_1] : memref<2x8x32xf32, #tpu.memory_space<vmem>>, vector<2x8x32xf32>
    %cst = arith.constant dense<0x7F800000> : vector<2x32xf32>
    %1 = vector.multi_reduction <minimumf>, %0, %cst [1] : vector<2x8x32xf32> to vector<2x32xf32>
    %2 = vector.shape_cast %1 : vector<2x32xf32> to vector<2x1x32xf32>
    %3 = vector.broadcast %2 : vector<2x1x32xf32> to vector<2x8x32xf32>
    %4 = arith.subf %0, %3 : vector<2x8x32xf32>
    %cst_2 = arith.constant 1.000000e+00 : f32
    %5 = vector.broadcast %cst_2 : f32 to vector<2x8x32xf32>
    %6 = arith.addf %4, %5 : vector<2x8x32xf32>
    %7 = arith.mulf %6, %6 : vector<2x8x32xf32>
    %8 = arith.mulf %7, %6 : vector<2x8x32xf32>
    %cst_3 = arith.constant dense<0.000000e+00> : vector<2x32xf32>
    %9 = vector.multi_reduction <add>, %8, %cst_3 [1] : vector<2x8x32xf32> to vector<2x32xf32>
    %cst_4 = arith.constant 1.250000e-01 : f32
    %10 = vector.broadcast %cst_4 : f32 to vector<2x32xf32>
    %11 = arith.mulf %9, %10 : vector<2x32xf32>
    %cst_5 = arith.constant 0.333333343 : f32
    %12 = vector.broadcast %cst_5 : f32 to vector<2x32xf32>
    %13 = math.powf %11, %12 : vector<2x32xf32>
    %14 = vector.shape_cast %2 : vector<2x1x32xf32> to vector<2x32xf32>
    %15 = arith.addf %13, %14 : vector<2x32xf32>
    %cst_6 = arith.constant 1.000000e+00 : f32
    %16 = vector.broadcast %cst_6 : f32 to vector<2x32xf32>
    %17 = arith.subf %15, %16 : vector<2x32xf32>
    %c0_7 = arith.constant 0 : index
    %c0_8 = arith.constant 0 : index
    %18 = vector.load %arg3[%c0_7, %c0_8] : memref<2x32xf32, #tpu.memory_space<vmem>>, vector<2x32xf32>
    tpu.vector_store %arg3[%c0_7, %c0_8], %17 {strides = array<i32>} : memref<2x32xf32, #tpu.memory_space<vmem>>, vector<2x32xf32>,
    return
  }
  func.func @transform_0(%arg0: i32, %arg1: i32) -> (i32, i32, i32) {
    %c0_i32 = arith.constant 0 : i32
    %c0_i32_0 = arith.constant 0 : i32
    return %arg0, %c0_i32, %arg1 : i32, i32, i32
  }
  func.func @transform_1(%arg0: i32, %arg1: i32) -> (i32, i32) {
    %c0_i32 = arith.constant 0 : i32
    return %arg0, %arg1 : i32, i32
  }
}

</mosaic_0001>

<bundles_post_ra>
// kernel: tpu_custom_call.1
= control target key start
LH: loop header
LB: loop body
LE: loop exit
PB: predicated region body
PF: predicated region fallthrough
CT: control target
= control target key end

     0   :  { %6 = vsyncpa [#allocation3], 0  ;;  %s232_s0 = inlined_call_operand.hbm [shape: f32[2,8,32], index: 0, kind: input, shape index: {}]   ;;  %s233_s1 = inlined_call_operand.hbm [shape: f32[2,32], index: 1, kind: output, shape index: {}]  }
   0x1   :  { %7 = vsyncpa [#allocation4], 0  ;;  %s190_s6 = smov [#allocation2]   ;;  %s142_s10 = scalar_lea.hbm %s232_s0, 256 }
   0x2   :  { %s13_s7 = sshll.u32 %s190_s6, 4  ;;  %p143_p0 = scmp.ne.s32.totalorder %s232_s0, %s142_s10  ;;  %s14_s7 = int_to_ptr.vmem [resolvable:$true] %s13_s7 }
   0x3   :  { %p146_p1 = scmp.lt.u32.totalorder %s142_s10, %s232_s0 }
   0x5   :  { %p148_p2 = pnand %p146_p1, %p143_p0 }
   0x7   :  { %151 = shalt.err (!%p148_p2)
}
   0x8   :  { %s152_s15 = scalar_lea.vmem %s14_s7, 256  ;;  %p157_p4 = scmp.lt.s32.totalorder %s14_s7, %s14_s7 }
   0x9   :  { %p153_p3 = scmp.ne.s32.totalorder %s14_s7, %s152_s15  ;;  %p158_p5 = scmp.lt.s32.totalorder %s152_s15, %s152_s15 }
   0xb   :  { %p159_p6 = por %p158_p5, %p157_p4 }
   0xd   :  { %p160_p7 = pnand %p159_p6, %p153_p3 }
   0xf   :  { %163 = shalt.err (!%p160_p7)
}
  0x10   :  { %s191_s16 = smov 128   ;;  %s192_s17 = smov 8  }
  0x11   :  { %19 = dma.hbm_to_vmem [thread:$0]  %s232_s0, 256, %s14_s7, [#allocation3], %s191_s16, %s191_s16, %s192_s17  }
  0x12   :  { %186 = dma.done.wait [#allocation3], 256  }
  0x13   :  { %187 = vsyncadd [#allocation3], 4294967040  ;;  %vm25_vm0 = vcmask 261120   ;;  %v23_v0 = vld [vmem:[#allocation2] sm:$0xff]  ;;  %v24_v1 = vld [vmem:[#allocation2 + $0x8] sm:$0xff]  ;;  %s193_s0 = smov [#allocation5]  }
  0x14   :  { %v26_v2 = vsel %vm25_vm0, %v23_v0, inf  ;;  %v33_v3 = vsel %vm25_vm0, %v24_v1, inf  ;;  %s83_s20 = sshll.u32 %s193_s0, 4  ;;  %vm72_vm11 = vcmask 1041409   ;;  %vm75_vm12 = vcmask 254976   ;;  %s84_s20 = int_to_ptr.vmem [resolvable:$true] %s83_s20 }
  0x15   :  { %v27_v4 = vrot.slane %v26_v2, 4  ;;  %v34_v5 = vrot.slane %v33_v3, 4  ;;  %s164_s21 = scalar_lea.vmem %s84_s20, 32  ;;  %p169_p9 = scmp.lt.s32.totalorder %s84_s20, %s84_s20 }
  0x16   :  { %p165_p8 = scmp.ne.s32.totalorder %s84_s20, %s164_s21  ;;  %p170_p10 = scmp.lt.s32.totalorder %s164_s21, %s164_s21 }
  0x17   :  { %v28_v6 = vmin.f32 %v26_v2, %v27_v4  ;;  %v35_v7 = vmin.f32 %v33_v3, %v34_v5 }
  0x18   :  { %p171_p11 = por %p170_p10, %p169_p9 }
  0x19   :  { %v29_v8 = vrot.slane %v28_v6, 2  ;;  %v36_v9 = vrot.slane %v35_v7, 2 }
  0x1a   :  { %p172_p12 = pnand %p171_p11, %p165_p8 }
  0x1b   :  { %v30_v10 = vmin.f32 %v28_v6, %v29_v8  ;;  %v37_v11 = vmin.f32 %v35_v7, %v36_v9 }
  0x1d   :  { %v31_v12 = vrot.slane %v30_v10, 1  ;;  %v38_v13 = vrot.slane %v37_v11, 1 }
  0x1f   :  { %v32_v14 = vmin.f32 %v30_v10, %v31_v12  ;;  %v39_v15 = vmin.f32 %v37_v11, %v38_v13 }
  0x21   :  { %v40_v16 = vsub.f32 %v23_v0, %v32_v14  ;;  %v41_v17 = vsub.f32 %v24_v1, %v39_v15 }
  0x23   :  { %v42_v18 = vadd.f32 1.0, %v40_v16  ;;  %v43_v19 = vadd.f32 1.0, %v41_v17 }
  0x25   :  { %v44_v20 = vmul.f32 %v42_v18, %v42_v18  ;;  %v45_v21 = vmul.f32 %v43_v19, %v43_v19 }
  0x27   :  { %v46_v22 = vmul.f32 %v44_v20, %v42_v18  ;;  %v47_v23 = vmul.f32 %v45_v21, %v43_v19 }
  0x29   :  { %v48_v24 = vsel %vm25_vm0, %v46_v22, 0.0  ;;  %v55_v25 = vsel %vm25_vm0, %v47_v23, 0.0 }
  0x2a   :  { %v49_v26 = vrot.slane %v48_v24, 4  ;;  %v56_v27 = vrot.slane %v55_v25, 4 }
  0x2c   :  { %v50_v28 = vadd.f32 %v49_v26, %v48_v24  ;;  %v57_v29 = vadd.f32 %v56_v27, %v55_v25 }
  0x2e   :  { %v51_v30 = vrot.slane %v50_v28, 2  ;;  %v58_v31 = vrot.slane %v57_v29, 2 }
  0x30   :  { %v52_v32 = vadd.f32 %v51_v30, %v50_v28  ;;  %v59_v33 = vadd.f32 %v58_v31, %v57_v29 }
  0x32   :  { %v53_v34 = vrot.slane %v52_v32, 1  ;;  %v60_v35 = vrot.slane %v59_v33, 1 }
  0x34   :  { %v54_v36 = vadd.f32 %v53_v34, %v52_v32  ;;  %v61_v37 = vadd.f32 %v60_v35, %v59_v33 }
  0x36   :  { %v62_v38 = vmul.f32 0.125, %v54_v36  ;;  %v63_v39 = vmul.f32 0.125, %v61_v37 }
  0x38   :  { %v96_v40 = vand.u32 2147483647, %v62_v38  ;;  %v114_v41 = vand.u32 2147483647, %v63_v39  ;;  %v100_v46 = vand.u32 2147483648, %v62_v38  ;;  %v118_v47 = vand.u32 2147483648, %v63_v39 }
  0x39   :  { %vm95_vm4 = vcmp.lt.f32.partialorder %v62_v38, 0.0  ;;  %vm94_vm6 = vcmp.eq.f32.partialorder %v62_v38, 0.0  ;;  %vm113_vm7 = vcmp.lt.f32.partialorder %v63_v39, 0.0  ;;  %vm112_vm9 = vcmp.eq.f32.partialorder %v63_v39, 0.0 }
  0x3a   :  { %134 = vlog2.f32 %v96_v40  ;;  %vm104_vm1 = vweird.f32 %v96_v40  ;;  %vm106_vm2 = vcmp.eq.f32.partialorder %v96_v40, 0.0  ;;  %vm122_vm3 = vweird.f32 %v114_v41 }
  0x3b   :  { %136 = vlog2.f32 %v114_v41  ;;  %vm124_vm5 = vcmp.eq.f32.partialorder %v114_v41, 0.0  ;;  %vm97_vm8 = vcmp.eq.f32.partialorder %v96_v40, inf  ;;  %vm115_vm10 = vcmp.eq.f32.partialorder %v114_v41, inf }
  0x44   :  { %v135_v42 = vpop.eup %134 }
  0x45   :  { %v137_v43 = vpop.eup %136  ;;  %v101_v44 = vmul.f32 0.33333334, %v135_v42 }
  0x46   :  { %v119_v45 = vmul.f32 0.33333334, %v137_v43 }
  0x47   :  { %138 = vpow2.f32 %v101_v44 }
  0x48   :  { %140 = vpow2.f32 %v119_v45 }
  0x51   :  { %v139_v48 = vpop.eup %138 }
  0x52   :  { %v141_v49 = vpop.eup %140  ;;  %v103_v50 = vor.u32 %v139_v48, %v100_v46 }
  0x53   :  { %v121_v51 = vor.u32 %v141_v49, %v118_v47 }
  0x54   :  { %v105_v52 = vsel %vm104_vm1, %v62_v38, %v103_v50 }
  0x55   :  { %v108_v53 = vsel %vm106_vm2, %v100_v46, %v105_v52  ;;  %v123_v54 = vsel %vm122_vm3, %v63_v39, %v121_v51 }
  0x56   :  { %v109_v55 = vsel %vm95_vm4, nan, %v108_v53  ;;  %v126_v56 = vsel %vm124_vm5, %v118_v47, %v123_v54 }
  0x57   :  { %v110_v57 = vsel %vm94_vm6, 0.0, %v109_v55  ;;  %v127_v58 = vsel %vm113_vm7, nan, %v126_v56 }
  0x58   :  { %v111_v59 = vsel %vm97_vm8, inf, %v110_v57  ;;  %v128_v60 = vsel %vm112_vm9, 0.0, %v127_v58 }
  0x59   :  { %v129_v61 = vsel %vm115_vm10, inf, %v128_v60  ;;  %v66_v62 = vadd.f32 %v111_v59, %v32_v14 }
  0x5a   :  { %v67_v63 = vadd.f32 %v129_v61, %v39_v15 }
  0x5b   :  { %v92_v0 = vadd.f32 -1.0, %v66_v62 }
  0x5c   :  { %v93_v1 = vadd.f32 -1.0, %v67_v63 }
  0x5e   :  { %v73_v2 = vsel %vm72_vm11, %v93_v1, %v92_v0 }
  0x5f   :  { %76 = vst.msk [vmem:[#allocation5] sm:$0x3] %vm75_vm12, %v73_v2 }
  0x60   :  { %175 = shalt.err (!%p172_p12)
}
  0x61   :  { %s176_s24 = scalar_lea.hbm %s233_s1, 32 }
  0x62   :  { %p177_p13 = scmp.ne.s32.totalorder %s233_s1, %s176_s24  ;;  %p180_p0 = scmp.lt.u32.totalorder %s176_s24, %s233_s1 }
  0x64   :  { %p182_p1 = pnand %p180_p0, %p177_p13 }
  0x66   :  { %185 = shalt.err (!%p182_p1)
}
  0x67   :  { %86 = dma.vmem_to_hbm [thread:$0]  %s84_s20, 32, %s233_s1, [#allocation4]  }
  0x68   :  { %188 = dma.done.wait [#allocation4], 32  }
  0x69   :  { %189 = vsyncadd [#allocation4], 4294967264 }
  0x6a   :  { %90 = vsyncpa [#allocation3], 1 }
  0x6b   :  { %91 = vsyncpa [#allocation4], 1 }

</bundles_post_ra>
